<compile_context>
chip_gen: v5e
topology: v5e:2x2
jax: 0.10.0
libtpu: 0.0.40
codegen_flags: <defaults>
</compile_context>

<pallas_src>
import functools
import math

import jax
import jax.numpy as jnp
from jax.experimental import pallas as pl
from jax.experimental.pallas import tpu as pltpu

EPS = 1e-15
_LOG_EPS = math.log(EPS)        # log(eps)      -> non-target classes
_LOG1P_EPS = math.log1p(EPS)    # log(1 + eps)  -> target class
_ONE_P_EPS = 1.0 + EPS

_TILE_BYTES = 2 * 1024 * 1024   # target logits bytes per tile (~85% HBM roofline zone)
_VMEM_LIMIT = 48 * 1024 * 1024  # safe on v5e/v6e (128 MiB) and v7x (64 MiB physical)


def _rel_entropy_kernel(logits_ref, targets_ref, loss_ref):
    # logits_ref: (TB, C) float, targets_ref: (TB, 1) int32, loss_ref: (TB, 1) f32
    x = logits_ref[...].astype(jnp.float32)
    tb, c = x.shape
    t = targets_ref[...]                                      # (TB, 1) int32

    # exact log-softmax pieces: per-row max, per-row log-denominator.
    m = jnp.max(x, axis=-1, keepdims=True)                    # (TB, 1)
    log_z = jnp.log(jnp.sum(jnp.exp(x - m), axis=-1, keepdims=True))   # one log per row

    # per-row sum of logits and the target logit (one masked row-sum; no float
    # one-hot, no per-element divide / per-element log of p1).
    row_sum = jnp.sum(x, axis=-1, keepdims=True)              # (TB, 1)
    col = jax.lax.broadcasted_iota(jnp.int32, (tb, c), 1)
    x_t = jnp.sum(jnp.where(col == t, x, 0.0), axis=-1, keepdims=True)  # (TB, 1)

    # log p2 at the target class and summed over all classes (log-softmax form).
    log_p2_t = (x_t - m) - log_z                              # (TB, 1)
    sum_log_p2 = row_sum - jnp.float32(c) * (m + log_z)       # (TB, 1)

    # KL(p1 || p2) per row, collapsed algebraically (q == 1.0, alpha == 1.0):
    #   (1+eps) * (log1p(eps) - log p2[t])
    # + eps     * ((C-1) * log(eps) - (sum_c log p2 - log p2[t]))
    loss_ref[...] = (
        jnp.float32(_ONE_P_EPS) * (jnp.float32(_LOG1P_EPS) - log_p2_t)
        + jnp.float32(EPS)
        * (jnp.float32((c - 1) * _LOG_EPS) - (sum_log_p2 - log_p2_t))
    )


def _choose_tb(B, C, itemsize):
    """Rows per tile: byte-budgeted, sublane-rounded, never larger than the array."""
    sub = 8 if itemsize >= 4 else 16          # sublane packing multiple
    if B <= sub:
        return B                              # single block == full batch dim
    target_rows = (_TILE_BYTES // max(itemsize, 1)) // max(C, 1)
    max_rows = max(sub, (target_rows // sub) * sub)
    return min(max_rows, (B // sub) * sub)


@functools.partial(jax.jit, static_argnames=("reduction",))
def relative_entropy_loss(logits, targets, reduction="mean"):
    B, C = logits.shape
    itemsize = jnp.dtype(logits.dtype).itemsize
    tb = _choose_tb(B, C, itemsize)
    num_blocks = pl.cdiv(B, tb)
    b_out = num_blocks * tb                   # padded output rows only (few bytes)

    targets2d = targets.astype(jnp.int32).reshape(B, 1)

    per_sample = pl.pallas_call(
        _rel_entropy_kernel,
        out_shape=jax.ShapeDtypeStruct((b_out, 1), jnp.float32),
        grid_spec=pltpu.PrefetchScalarGridSpec(
            num_scalar_prefetch=0,
            grid=(num_blocks,),
            in_specs=[
                pl.BlockSpec((tb, C), lambda i: (i, 0)),
                pl.BlockSpec((tb, 1), lambda i: (i, 0)),
            ],
            out_specs=pl.BlockSpec((tb, 1), lambda i: (i, 0)),
        ),
        compiler_params=pltpu.CompilerParams(
            dimension_semantics=("parallel",),
            vmem_limit_bytes=_VMEM_LIMIT,
        ),
    )(logits, targets2d)

    # Slice BEFORE reducing: any rows beyond B in the last (partial) block hold
    # undefined values and must never reach the mean/sum.
    loss = per_sample[:B, 0]
    if reduction == "mean":
        return jnp.mean(loss)
    elif reduction == "sum":
        return jnp.sum(loss)
    else:  # 'none'
        return loss


if __name__ == "__main__":
    key = jax.random.PRNGKey(0)
    k1, k2 = jax.random.split(key)

    B, C = 10, 32  # batch not a multiple of 8 -> exercises the partial last block
    logits = jax.random.normal(k1, (B, C), dtype=jnp.float32)
    targets = jax.random.randint(k2, (B,), 0, C, dtype=jnp.int32)

    out = jax.block_until_ready(relative_entropy_loss(logits, targets, reduction="mean"))

    # reference in plain JAX (mirrors the PyTorch formulation)
    onehot = jax.nn.one_hot(targets, C, dtype=jnp.float32)
    probs = jax.nn.softmax(logits, axis=1)
    p1, p2 = onehot + EPS, probs + EPS
    ref_none = jnp.sum(p1 * jnp.log(p1 / p2), axis=1)
    ref_mean = jnp.mean(ref_none)
    assert jnp.allclose(out, ref_mean, rtol=1e-4, atol=1e-4), (out, ref_mean)

    out_none = jax.block_until_ready(relative_entropy_loss(logits, targets, reduction="none"))
    assert out_none.shape == (B,)
    assert jnp.allclose(out_none, ref_none, rtol=1e-4, atol=1e-4), (out_none, ref_none)

    # bf16 logits pass straight through (kernel math stays f32).
    logits_bf = logits.astype(jnp.bfloat16)
    out_bf = jax.block_until_ready(relative_entropy_loss(logits_bf, targets, reduction="sum"))
    probs_bf = jax.nn.softmax(logits_bf.astype(jnp.float32), axis=1)
    ref_bf = jnp.sum(jnp.sum((onehot + EPS) * jnp.log((onehot + EPS) / (probs_bf + EPS)), axis=1))
    assert jnp.allclose(out_bf, ref_bf, rtol=1e-3, atol=1e-3), (out_bf, ref_bf)

    print("KERNEL_OK")
</pallas_src>

<mosaic_0001>
module attributes {stable_mosaic.version = 11 : i64} {
  func.func @_rel_entropy_kernel(%arg0: i32, %arg1: memref<8x32xf32, #tpu.memory_space<vmem>>, %arg2: memref<8x1xi32, #tpu.memory_space<vmem>>, %arg3: memref<8x1xf32, #tpu.memory_space<vmem>>) attributes {dimension_semantics = [#tpu.dimension_semantics<parallel>], iteration_bounds = array<i64: 2>, scalar_prefetch = 0 : i64, scratch_operands = 0 : i64, tpu.core_type = #tpu.core_type<tc>, window_params = [{transform_indices = @transform_0, window_bounds = array<i64: 8, 32>}, {transform_indices = @transform_1, window_bounds = array<i64: 8, 1>}, {transform_indices = @transform_2, window_bounds = array<i64: 8, 1>}]} {
    %c0 = arith.constant 0 : index
    %c0_0 = arith.constant 0 : index
    %0 = vector.load %arg1[%c0, %c0_0] : memref<8x32xf32, #tpu.memory_space<vmem>>, vector<8x32xf32>
    %c0_1 = arith.constant 0 : index
    %c0_2 = arith.constant 0 : index
    %1 = vector.load %arg2[%c0_1, %c0_2] : memref<8x1xi32, #tpu.memory_space<vmem>>, vector<8x1xi32>
    %cst = arith.constant dense<0xFF800000> : vector<8xf32>
    %2 = vector.multi_reduction <maximumf>, %0, %cst [1] : vector<8x32xf32> to vector<8xf32>
    %3 = vector.shape_cast %2 : vector<8xf32> to vector<8x1xf32>
    %4 = vector.broadcast %3 : vector<8x1xf32> to vector<8x32xf32>
    %5 = arith.subf %0, %4 : vector<8x32xf32>
    %6 = math.exp %5 : vector<8x32xf32>
    %cst_3 = arith.constant dense<0.000000e+00> : vector<8xf32>
    %7 = vector.multi_reduction <add>, %6, %cst_3 [1] : vector<8x32xf32> to vector<8xf32>
    %8 = vector.shape_cast %7 : vector<8xf32> to vector<8x1xf32>
    %9 = math.log %8 : vector<8x1xf32>
    %cst_4 = arith.constant dense<0.000000e+00> : vector<8xf32>
    %10 = vector.multi_reduction <add>, %0, %cst_4 [1] : vector<8x32xf32> to vector<8xf32>
    %11 = vector.shape_cast %10 : vector<8xf32> to vector<8x1xf32>
    %12 = tpu.iota {dimensions = array<i32: 1>} : vector<8x32xi32>
    %13 = vector.broadcast %1 : vector<8x1xi32> to vector<8x32xi32>
    %14 = arith.cmpi eq, %12, %13 : vector<8x32xi32>
    %cst_5 = arith.constant 0.000000e+00 : f32
    %15 = vector.broadcast %cst_5 : f32 to vector<8x32xf32>
    %16 = arith.select %14, %0, %15 : vector<8x32xi1>, vector<8x32xf32>
    %cst_6 = arith.constant dense<0.000000e+00> : vector<8xf32>
    %17 = vector.multi_reduction <add>, %16, %cst_6 [1] : vector<8x32xf32> to vector<8xf32>
    %18 = vector.shape_cast %17 : vector<8xf32> to vector<8x1xf32>
    %19 = arith.subf %18, %3 : vector<8x1xf32>
    %20 = arith.subf %19, %9 : vector<8x1xf32>
    %21 = arith.addf %3, %9 : vector<8x1xf32>
    %cst_7 = arith.constant 3.200000e+01 : f32
    %22 = vector.broadcast %cst_7 : f32 to vector<8x1xf32>
    %23 = arith.mulf %22, %21 : vector<8x1xf32>
    %24 = arith.subf %11, %23 : vector<8x1xf32>
    %cst_8 = arith.constant 1.000000e-15 : f32
    %25 = vector.broadcast %cst_8 : f32 to vector<8x1xf32>
    %26 = arith.subf %25, %20 : vector<8x1xf32>
    %cst_9 = arith.constant 1.000000e+00 : f32
    %27 = vector.broadcast %cst_9 : f32 to vector<8x1xf32>
    %28 = arith.mulf %27, %26 : vector<8x1xf32>
    %29 = arith.subf %24, %20 : vector<8x1xf32>
    %cst_10 = arith.constant -1070.70203 : f32
    %30 = vector.broadcast %cst_10 : f32 to vector<8x1xf32>
    %31 = arith.subf %30, %29 : vector<8x1xf32>
    %cst_11 = arith.constant 1.000000e-15 : f32
    %32 = vector.broadcast %cst_11 : f32 to vector<8x1xf32>
    %33 = arith.mulf %32, %31 : vector<8x1xf32>
    %34 = arith.addf %28, %33 : vector<8x1xf32>
    %c0_12 = arith.constant 0 : index
    %c0_13 = arith.constant 0 : index
    %35 = vector.load %arg3[%c0_12, %c0_13] : memref<8x1xf32, #tpu.memory_space<vmem>>, vector<8x1xf32>
    tpu.vector_store %arg3[%c0_12, %c0_13], %34 {strides = array<i32>} : memref<8x1xf32, #tpu.memory_space<vmem>>, vector<8x1xf32>,
    return
  }
  func.func @transform_0(%arg0: i32) -> (i32, i32) {
    %c0_i32 = arith.constant 0 : i32
    %c0_i32_0 = arith.constant 0 : i32
    return %arg0, %c0_i32 : i32, i32
  }
  func.func @transform_1(%arg0: i32) -> (i32, i32) {
    %c0_i32 = arith.constant 0 : i32
    %c0_i32_0 = arith.constant 0 : i32
    return %arg0, %c0_i32 : i32, i32
  }
  func.func @transform_2(%arg0: i32) -> (i32, i32) {
    %c0_i32 = arith.constant 0 : i32
    %c0_i32_0 = arith.constant 0 : i32
    return %arg0, %c0_i32 : i32, i32
  }
}

</mosaic_0001>

<bundles_post_ra>
// kernel: relative_entropy_loss.1
= control target key start
LH: loop header
LB: loop body
LE: loop exit
PB: predicated region body
PF: predicated region fallthrough
CT: control target
= control target key end

     0   :  { %s308_s9 = smov 0   ;;  %s337_s0 = inlined_call_operand.vmem [shape: f32[10,32], index: 0, kind: input, shape index: {}]   ;;  %s338_s1 = inlined_call_operand.vmem [shape: s32[10,1], index: 1, kind: input, shape index: {}]   ;;  %s339_s2 = inlined_call_operand.vmem [shape: f32[16,1], index: 2, kind: output, shape index: {}]  }
   0x1 LB: > { %s260_s10 = sadd.s32 4294967295, %s290_s9   ;;  %p264_p0 = scmp.ge.s32.totalorder %s290_s9, 1  ;;  %s290_s9 = sphi %s308_s9, %s12_s9  }
   0x2   : > { %p120_p1 = scmp.lt.s32.totalorder %s290_s9, 3 }
   0x4   : > { %p121_p2 = pnand %p264_p0, %p120_p1 }
   0x5   : > { %p144_p3 = scmp.lt.s32.totalorder (!%p121_p2), %s260_s10, 1 }
   0x6   : > { %124 = sbr.rel (%p121_p2) target bundleno = 284 (0x11c), region = 28 }
   0xb   : > { %v292_v0 = vmov 0   ;;  %s341_s10 = smov (!%p144_p3, %s260_s10), 1  ;;  %vm158_vm0 = vcmask 261120   ;;  %v173_v10 = vlaneseq  ;;  %vm193_vm2 = vcmask 7168  }
   0xc   : > { %279 = vset.pattern.permute.xlu0 %v292_v0  ;;  %s316_s11 = sshll.u32 %s341_s10, 3 }
   0xd   : > { %s147_s14 = scalar_lea.vmem %s337_s0, %s316_s11  ;;  %s151_s17 = scalar_lea.vmem %s338_s1, %s316_s11  ;;  %v174_v11 = vand.u32 127, %v173_v10 }
   0xe   : > { %v156_v1 = vld [vmem:[%s147_s14] sm:$0xff]  ;;  %s155_s20 = scalar_lea.vmem %s339_s2, %s316_s11 }
   0xf   : > { %v159_v2 = vsel %vm158_vm0, %v156_v1, -inf  ;;  %v157_v3 = vld [vmem:[%s151_s17] sm:$0xff]  ;;  %v170_v4 = vsel %vm158_vm0, %v156_v1, 0.0 }
  0x10   : > { %160 = vmax.xlane.f32.xlu0 %v159_v2  ;;  %171 = vadd.xlane.f32.xlu2 %v170_v4 }
  0x24   : > { %176 = vperm.xlu0 %279, %v157_v3  }
  0x83   : > { %v161_v5 = vpop.xlane.xlu0 %160  ;;  %v172_v21 = vpop.xlane.xlu2 %171 }
  0x84   : > { %v162_v6 = vsub.f32 %v156_v1, %v161_v5 }
  0x86   : > { %v163_v7 = vmul.f32 1.442695, %v162_v6 }
  0x88   : > { %280 = vpow2.f32 %v163_v7 }
  0x8e   : > { %v281_v8 = vpop.eup %280 }
  0x8f   : > { %v165_v9 = vsel %vm158_vm0, %v281_v8, 0.0 }
  0x90   : > { %166 = vadd.xlane.f32.xlu1 %v165_v9 }
  0x96   : > { %v177_v12 = vpop.permute.xlu0 %176 }
  0x97   : > { %vm178_vm1 = vcmp.eq.s32.totalorder %v174_v11, %v177_v12 }
  0x98   : > { %v179_v13 = vsel %vm178_vm1, %v156_v1, 0.0 }
  0x99   : > { %v180_v14 = vsel %vm158_vm0, %v179_v13, 0.0 }
  0x9a   : > { %181 = vadd.xlane.f32.xlu1 %v180_v14 }
 0x103   : > { %v167_v15 = vpop.xlane.xlu1 %166 }
 0x104   : > { %282 = vlog2.f32 %v167_v15 }
 0x10a   : > { %v283_v16 = vpop.eup %282 }
 0x10b   : > { %v169_v17 = vmul.f32 0.6931472, %v283_v16 }
 0x10d   : > { %v182_v18 = vpop.xlane.xlu1 %181  ;;  %v185_v19 = vadd.f32 %v169_v17, %v161_v5 }
 0x10e   : > { %v183_v20 = vsub.f32 %v182_v18, %v161_v5 }
 0x10f   : > { %v186_v22 = vmul.f32 32.0, %v185_v19 }
 0x110   : > { %v184_v23 = vsub.f32 %v183_v20, %v169_v17 }
 0x111   : > { %v187_v24 = vsub.f32 %v172_v21, %v186_v22 }
 0x112   : > { %v188_v27 = vsub.f32 1e-15, %v184_v23 }
 0x113   : > { %v189_v25 = vsub.f32 %v187_v24, %v184_v23 }
 0x115   : > { %v190_v26 = vsub.f32 -1070.702, %v189_v25 }
 0x117   : > { %v191_v28 = vmul.f32 1e-15, %v190_v26 }
 0x119   : > { %v192_v29 = vadd.f32 %v191_v28, %v188_v27 }
 0x11b   : > { %194 = vst.msk [vmem:[%s155_s20] sm:$0xff] %vm193_vm2, %v192_v29 }
 0x11c PF: > { %s12_s9 = sadd.s32 1, %s290_s9  }
 0x11d   : > { %p9_p4 = scmp.ge.s32.totalorder %s12_s9, 4  }
 0x11f   :  { %11 = sbr.rel (!%p9_p4) target bundleno = 1 (0x1), region = 61 }

</bundles_post_ra>
